<compile_context>
chip_gen: v5e
topology: v5e:2x2
jax: 0.10.0
libtpu: 0.0.40
codegen_flags: <defaults>
</compile_context>

<pallas_src>
import jax
import jax.numpy as jnp
from jax import lax
from jax.experimental import pallas as pl
from jax.experimental.pallas import tpu as pltpu


# -----------------------------------------------------------------------------
# Pallas kernel: complex contraction over input channels, per Fourier mode.
#   out[b*Cout + o, m] = sum_i x[i, b, m] * w[i, o, m]     (complex multiply)
#
# Block shapes seen by the kernel:
#   x_ref : (2ri, Cin, bt, mpt)
#   w_ref : (2ri, Cin, Cout, mpt)
#   o_ref : (2ri, bt*Cout, mpt)      rows ordered (batch, out-channel)
# -----------------------------------------------------------------------------
def _spectral_mul_kernel(x_ref, w_ref, o_ref):
    _, cin, bt, mpt = x_ref.shape
    cout = w_ref.shape[2]

    # Per batch row: contract over Cin with a fori_loop so only the two
    # (Cout, mpt) f32 accumulators are live (bounded vreg working set,
    # independent of bt).  Modest unroll keeps the loop visible to the LLO
    # scheduler without exploding instruction count at large Cin.
    # NOTE: if profiling shows the VALU slot saturating at large Cin, the
    # 3-multiply complex form (T1 = sum xr*wr, T2 = sum xi*wi,
    # T3 = sum (xr+xi)*(wr+wi)) cuts VALU ops ~30%; not applied here.
    for b in range(bt):                          # static, small (<= 8)
        def body(i, carry):
            acc_r, acc_i = carry
            xr = x_ref[0, i, pl.ds(b, 1), :].astype(jnp.float32)   # (1, mpt)
            xi = x_ref[1, i, pl.ds(b, 1), :].astype(jnp.float32)
            wr = w_ref[0, i].astype(jnp.float32)                   # (Cout, mpt)
            wi = w_ref[1, i].astype(jnp.float32)
            acc_r = acc_r + (xr * wr - xi * wi)
            acc_i = acc_i + (xr * wi + xi * wr)
            return acc_r, acc_i

        init = (jnp.zeros((cout, mpt), jnp.float32),
                jnp.zeros((cout, mpt), jnp.float32))
        acc_r, acc_i = lax.fori_loop(0, cin, body, init, unroll=min(cin, 8))

        # Rows [b*Cout, (b+1)*Cout) of the flattened (batch, out-channel)
        # output block; dense, unmasked stores whenever Cout % 8 == 0.
        o_ref[0, pl.ds(b * cout, cout), :] = acc_r
        o_ref[1, pl.ds(b * cout, cout), :] = acc_i


def _vmem_limit_bytes():
    """Per-generation VMEM budget: ~75% of physical capacity
    (~48 MiB on v7x, ~96 MiB on v5e/v6e).  Falls back to a v7x-safe 48 MiB."""
    try:
        cap = int(pltpu.get_tpu_info().vmem_capacity_bytes)
    except Exception:
        cap = 64 * 1024 * 1024
    return (cap * 3) // 4


def _pick_mode_tile(mp, cin, cout, bt, w_itemsize, vmem_limit):
    """Largest multiple-of-128 divisor of mp such that (a) the two (Cout, mpt)
    f32 accumulators stay comfortably in vregs and (b) the double-buffered
    x/w/out blocks fit within the per-generation VMEM budget."""
    acc_budget = 128 * 1024                      # ~32 vregs for the acc pair
    n128 = mp // 128
    for k in range(n128, 0, -1):
        if n128 % k:
            continue
        mpt = k * 128
        acc_bytes = 2 * cout * mpt * 4
        blk_bytes = 2 * (2 * cin * bt * mpt * 4            # x block
                         + 2 * cin * cout * mpt * w_itemsize  # w block
                         + 2 * bt * cout * mpt * 4)            # out block
        if acc_bytes <= acc_budget and blk_bytes <= (vmem_limit * 4) // 5:
            return mpt
    return 128


def _spectral_mul(xs, ws):
    """xs: (2, Cin, B,    Mp)  float32
       ws: (2, Cin, Cout, Mp)  float32 (or bfloat16 on v6e/v7x)
       returns (2, B*Cout, Mp) float32, rows ordered (batch, out-channel)."""
    _, cin, bsz, mp = xs.shape
    cout = ws.shape[2]

    # Batch tile: whole batch when small, else tiles of 8 so the x block's
    # sublane dim is either the full batch or a multiple of 8.
    bt = 8 if (bsz > 8 and bsz % 8 == 0) else bsz
    n_bt = bsz // bt

    vmem_limit = _vmem_limit_bytes()
    mpt = _pick_mode_tile(mp, cin, cout, bt, jnp.dtype(ws.dtype).itemsize,
                          vmem_limit)
    n_mt = mp // mpt

    x_spec = pl.BlockSpec((2, cin, bt, mpt), lambda mt, jb: (0, 0, jb, mt))
    # Weight block index is independent of the (innermost) batch axis -> each
    # weight tile is DMA'd once per mode tile and stays resident across all
    # batch tiles.  (Could also use pipeline_mode=pl.Buffered(1) on it to
    # save one VMEM buffer since it is revisited.)
    w_spec = pl.BlockSpec((2, cin, cout, mpt), lambda mt, jb: (0, 0, 0, mt))
    o_spec = pl.BlockSpec((2, bt * cout, mpt), lambda mt, jb: (0, jb, mt))

    out_shape = jax.ShapeDtypeStruct((2, bsz * cout, mp), jnp.float32)

    return pl.pallas_call(
        _spectral_mul_kernel,
        out_shape=out_shape,
        grid=(n_mt, n_bt),                       # batch innermost
        in_specs=[x_spec, w_spec],
        out_specs=o_spec,
        compiler_params=pltpu.CompilerParams(
            dimension_semantics=("parallel", "parallel"),
            vmem_limit_bytes=vmem_limit),
    )(xs, ws)


# -----------------------------------------------------------------------------
# Module wrapper (FFT glue stays in plain JAX)
# -----------------------------------------------------------------------------
class ComplexSpectralConv2d:
    def __init__(self, in_channels, out_channels, modes1, modes2, key,
                 weight_dtype=jnp.float32):
        self.in_channels = in_channels
        self.out_channels = out_channels
        self.modes1 = modes1
        self.modes2 = modes2
        scale = 1.0 / (in_channels * out_channels)
        k1, k2, k3, k4 = jax.random.split(key, 4)
        shape = (in_channels, out_channels, modes1, modes2)
        # torch.rand(..., dtype=torch.cfloat): real & imag ~ U[0,1)
        self.weights1 = (scale * (jax.random.uniform(k1, shape, jnp.float32)
                                  + 1j * jax.random.uniform(k2, shape, jnp.float32))
                         ).astype(jnp.complex64)
        self.weights2 = (scale * (jax.random.uniform(k3, shape, jnp.float32)
                                  + 1j * jax.random.uniform(k4, shape, jnp.float32))
                         ).astype(jnp.complex64)

        # Pack the kernel-side weights ONCE (not per forward call): corners
        # folded along the mode axis, padded to a lane-dense multiple of 128,
        # layout (2 real/imag, Cin, Cout, Mp).
        # weight_dtype=jnp.bfloat16 halves the dominant weight DMA on
        # v6e/v7x (f32 accumulation in-kernel); keep float32 on v5e.
        m_tot = 2 * modes1 * modes2
        self._m_tot = m_tot
        self._mp = ((m_tot + 127) // 128) * 128
        w_c = jnp.concatenate([self.weights1, self.weights2], axis=2)
        w_c = w_c.reshape(in_channels, out_channels, m_tot)
        ws = jnp.stack([jnp.real(w_c), jnp.imag(w_c)], axis=0)  # (2,Cin,Cout,Mtot)
        if self._mp != m_tot:
            ws = jnp.pad(ws, ((0, 0), (0, 0), (0, 0), (0, self._mp - m_tot)))
        self._ws_packed = ws.astype(weight_dtype)

    def __call__(self, x):
        # x: (B, Cin, H, W), real or complex
        B, Cin, H, W = x.shape
        m1, m2 = self.modes1, self.modes2
        Cout = self.out_channels
        m_tot, Mp = self._m_tot, self._mp

        # TODO(synk): FFT/IFFT have no Pallas TPU primitive; computed with jnp.fft.
        # Separable forward FFT: transform along W, keep only the first m2
        # columns, then transform along H on the narrow slab (== fft2 + slice).
        x_ft = jnp.fft.fft(x, axis=-1)[..., :m2]            # (B, Cin, H, m2)
        x_ft = jnp.fft.fft(x_ft, axis=-2)                   # (B, Cin, H, m2)

        # Fold the two retained corners into one mode axis; pad once.
        x_modes = jnp.concatenate([x_ft[:, :, :m1, :],
                                   x_ft[:, :, H - m1:, :]], axis=2)  # (B,Cin,2*m1,m2)
        x_modes = x_modes.reshape(B, Cin, m_tot)
        x_modes = jnp.transpose(x_modes, (1, 0, 2))                  # (Cin, B, Mtot)
        xs = jnp.stack([jnp.real(x_modes), jnp.imag(x_modes)],
                       axis=0).astype(jnp.float32)                   # (2,Cin,B,Mtot)
        if Mp != m_tot:
            xs = jnp.pad(xs, ((0, 0), (0, 0), (0, 0), (0, Mp - m_tot)))

        out = _spectral_mul(xs, self._ws_packed)             # (2, B*Cout, Mp)
        out = out[..., :m_tot]
        out_c = (out[0] + 1j * out[1]).astype(jnp.complex64)
        out_c = out_c.reshape(B, Cout, 2 * m1, m2)

        # Inverse: scatter the two corners back into the m2 retained columns
        # (if H < 2*m1 the high corner overwrites the overlap, matching the
        # PyTorch assignment order), IFFT along H on the narrow slab,
        # zero-pad to W, then IFFT along W.
        out_cols = jnp.zeros((B, Cout, H, m2), dtype=jnp.complex64)
        out_cols = out_cols.at[:, :, :m1, :].set(out_c[:, :, :m1, :])
        out_cols = out_cols.at[:, :, H - m1:, :].set(out_c[:, :, m1:, :])
        y = jnp.fft.ifft(out_cols, axis=-2)                  # (B, Cout, H, m2)
        y = jnp.pad(y, ((0, 0), (0, 0), (0, 0), (0, W - m2)))
        y = jnp.fft.ifft(y, axis=-1)                         # (B, Cout, H, W)
        return y


# Pure-JAX reference (mirrors the PyTorch forward) for verification
def _reference(x, w1, w2, m1, m2):
    B, Cin, H, W = x.shape
    Cout = w1.shape[1]
    x_ft = jnp.fft.fft2(x)
    out_ft = jnp.zeros((B, Cout, H, W), dtype=jnp.complex64)
    out_ft = out_ft.at[:, :, :m1, :m2].set(
        jnp.einsum('bixy,ioxy->boxy', x_ft[:, :, :m1, :m2], w1))
    out_ft = out_ft.at[:, :, H - m1:, :m2].set(
        jnp.einsum('bixy,ioxy->boxy', x_ft[:, :, H - m1:, :m2], w2))
    return jnp.fft.ifft2(out_ft)


if __name__ == "__main__":
    key = jax.random.PRNGKey(0)
    k_x_r, k_x_i, k_w = jax.random.split(key, 3)

    B, Cin, Cout, H, W = 2, 4, 4, 16, 16
    modes1, modes2 = 6, 8

    # complex input (module handles real or complex; fft is used either way)
    x = (jax.random.normal(k_x_r, (B, Cin, H, W), jnp.float32)
         + 1j * jax.random.normal(k_x_i, (B, Cin, H, W), jnp.float32)
         ).astype(jnp.complex64)

    layer = ComplexSpectralConv2d(Cin, Cout, modes1, modes2, k_w)

    y = jax.block_until_ready(layer(x))
    y_ref = jax.block_until_ready(
        _reference(x, layer.weights1, layer.weights2, modes1, modes2))

    assert y.shape == (B, Cout, H, W)
    assert y.dtype == jnp.complex64
    max_err = float(jnp.max(jnp.abs(y - y_ref)))
    assert max_err < 1e-4, f"mismatch vs reference: {max_err}"

    print("KERNEL_OK")
</pallas_src>

<mosaic_0001>
module attributes {stable_mosaic.version = 11 : i64} {
  func.func @_spectral_mul_kernel(%arg0: i32, %arg1: i32, %arg2: memref<2x4x2x128xf32, #tpu.memory_space<vmem>>, %arg3: memref<2x4x4x128xf32, #tpu.memory_space<vmem>>, %arg4: memref<2x8x128xf32, #tpu.memory_space<vmem>>) attributes {dimension_semantics = [#tpu.dimension_semantics<parallel>, #tpu.dimension_semantics<parallel>], iteration_bounds = array<i64: 1, 1>, scalar_prefetch = 0 : i64, scratch_operands = 0 : i64, tpu.core_type = #tpu.core_type<tc>, window_params = [{transform_indices = @transform_0, window_bounds = array<i64: 2, 4, 2, 128>}, {transform_indices = @transform_1, window_bounds = array<i64: 2, 4, 4, 128>}, {transform_indices = @transform_2, window_bounds = array<i64: 2, 8, 128>}]} {
    %cst = arith.constant 0.000000e+00 : f32
    %0 = vector.broadcast %cst : f32 to vector<4x128xf32>
    %cst_0 = arith.constant 0.000000e+00 : f32
    %1 = vector.broadcast %cst_0 : f32 to vector<4x128xf32>
    %c0_i32 = arith.constant 0 : i32
    %c0 = arith.constant 0 : index
    %2 = arith.index_cast %c0_i32 : i32 to index
    %c0_1 = arith.constant 0 : index
    %c0_2 = arith.constant 0 : index
    %3 = vector.load %arg2[%c0, %2, %c0_1, %c0_2] : memref<2x4x2x128xf32, #tpu.memory_space<vmem>>, vector<1x1x1x128xf32>
    %4 = vector.shape_cast %3 : vector<1x1x1x128xf32> to vector<1x128xf32>
    %c1 = arith.constant 1 : index
    %5 = arith.index_cast %c0_i32 : i32 to index
    %c0_3 = arith.constant 0 : index
    %c0_4 = arith.constant 0 : index
    %6 = vector.load %arg2[%c1, %5, %c0_3, %c0_4] : memref<2x4x2x128xf32, #tpu.memory_space<vmem>>, vector<1x1x1x128xf32>
    %7 = vector.shape_cast %6 : vector<1x1x1x128xf32> to vector<1x128xf32>
    %c0_5 = arith.constant 0 : index
    %8 = arith.index_cast %c0_i32 : i32 to index
    %c0_6 = arith.constant 0 : index
    %c0_7 = arith.constant 0 : index
    %9 = vector.load %arg3[%c0_5, %8, %c0_6, %c0_7] : memref<2x4x4x128xf32, #tpu.memory_space<vmem>>, vector<1x1x4x128xf32>
    %10 = vector.shape_cast %9 : vector<1x1x4x128xf32> to vector<4x128xf32>
    %c1_8 = arith.constant 1 : index
    %11 = arith.index_cast %c0_i32 : i32 to index
    %c0_9 = arith.constant 0 : index
    %c0_10 = arith.constant 0 : index
    %12 = vector.load %arg3[%c1_8, %11, %c0_9, %c0_10] : memref<2x4x4x128xf32, #tpu.memory_space<vmem>>, vector<1x1x4x128xf32>
    %13 = vector.shape_cast %12 : vector<1x1x4x128xf32> to vector<4x128xf32>
    %14 = vector.broadcast %4 : vector<1x128xf32> to vector<4x128xf32>
    %15 = arith.mulf %14, %10 : vector<4x128xf32>
    %16 = vector.broadcast %7 : vector<1x128xf32> to vector<4x128xf32>
    %17 = arith.mulf %16, %13 : vector<4x128xf32>
    %18 = arith.subf %15, %17 : vector<4x128xf32>
    %19 = arith.addf %0, %18 : vector<4x128xf32>
    %20 = vector.broadcast %4 : vector<1x128xf32> to vector<4x128xf32>
    %21 = arith.mulf %20, %13 : vector<4x128xf32>
    %22 = vector.broadcast %7 : vector<1x128xf32> to vector<4x128xf32>
    %23 = arith.mulf %22, %10 : vector<4x128xf32>
    %24 = arith.addf %21, %23 : vector<4x128xf32>
    %25 = arith.addf %1, %24 : vector<4x128xf32>
    %c1_i32 = arith.constant 1 : i32
    %c0_11 = arith.constant 0 : index
    %26 = arith.index_cast %c1_i32 : i32 to index
    %c0_12 = arith.constant 0 : index
    %c0_13 = arith.constant 0 : index
    %27 = vector.load %arg2[%c0_11, %26, %c0_12, %c0_13] : memref<2x4x2x128xf32, #tpu.memory_space<vmem>>, vector<1x1x1x128xf32>
    %28 = vector.shape_cast %27 : vector<1x1x1x128xf32> to vector<1x128xf32>
    %c1_14 = arith.constant 1 : index
    %29 = arith.index_cast %c1_i32 : i32 to index
    %c0_15 = arith.constant 0 : index
    %c0_16 = arith.constant 0 : index
    %30 = vector.load %arg2[%c1_14, %29, %c0_15, %c0_16] : memref<2x4x2x128xf32, #tpu.memory_space<vmem>>, vector<1x1x1x128xf32>
    %31 = vector.shape_cast %30 : vector<1x1x1x128xf32> to vector<1x128xf32>
    %c0_17 = arith.constant 0 : index
    %32 = arith.index_cast %c1_i32 : i32 to index
    %c0_18 = arith.constant 0 : index
    %c0_19 = arith.constant 0 : index
    %33 = vector.load %arg3[%c0_17, %32, %c0_18, %c0_19] : memref<2x4x4x128xf32, #tpu.memory_space<vmem>>, vector<1x1x4x128xf32>
    %34 = vector.shape_cast %33 : vector<1x1x4x128xf32> to vector<4x128xf32>
    %c1_20 = arith.constant 1 : index
    %35 = arith.index_cast %c1_i32 : i32 to index
    %c0_21 = arith.constant 0 : index
    %c0_22 = arith.constant 0 : index
    %36 = vector.load %arg3[%c1_20, %35, %c0_21, %c0_22] : memref<2x4x4x128xf32, #tpu.memory_space<vmem>>, vector<1x1x4x128xf32>
    %37 = vector.shape_cast %36 : vector<1x1x4x128xf32> to vector<4x128xf32>
    %38 = vector.broadcast %28 : vector<1x128xf32> to vector<4x128xf32>
    %39 = arith.mulf %38, %34 : vector<4x128xf32>
    %40 = vector.broadcast %31 : vector<1x128xf32> to vector<4x128xf32>
    %41 = arith.mulf %40, %37 : vector<4x128xf32>
    %42 = arith.subf %39, %41 : vector<4x128xf32>
    %43 = arith.addf %19, %42 : vector<4x128xf32>
    %44 = vector.broadcast %28 : vector<1x128xf32> to vector<4x128xf32>
    %45 = arith.mulf %44, %37 : vector<4x128xf32>
    %46 = vector.broadcast %31 : vector<1x128xf32> to vector<4x128xf32>
    %47 = arith.mulf %46, %34 : vector<4x128xf32>
    %48 = arith.addf %45, %47 : vector<4x128xf32>
    %49 = arith.addf %25, %48 : vector<4x128xf32>
    %c2_i32 = arith.constant 2 : i32
    %c0_23 = arith.constant 0 : index
    %50 = arith.index_cast %c2_i32 : i32 to index
    %c0_24 = arith.constant 0 : index
    %c0_25 = arith.constant 0 : index
    %51 = vector.load %arg2[%c0_23, %50, %c0_24, %c0_25] : memref<2x4x2x128xf32, #tpu.memory_space<vmem>>, vector<1x1x1x128xf32>
    %52 = vector.shape_cast %51 : vector<1x1x1x128xf32> to vector<1x128xf32>
    %c1_26 = arith.constant 1 : index
    %53 = arith.index_cast %c2_i32 : i32 to index
    %c0_27 = arith.constant 0 : index
    %c0_28 = arith.constant 0 : index
    %54 = vector.load %arg2[%c1_26, %53, %c0_27, %c0_28] : memref<2x4x2x128xf32, #tpu.memory_space<vmem>>, vector<1x1x1x128xf32>
    %55 = vector.shape_cast %54 : vector<1x1x1x128xf32> to vector<1x128xf32>
    %c0_29 = arith.constant 0 : index
    %56 = arith.index_cast %c2_i32 : i32 to index
    %c0_30 = arith.constant 0 : index
    %c0_31 = arith.constant 0 : index
    %57 = vector.load %arg3[%c0_29, %56, %c0_30, %c0_31] : memref<2x4x4x128xf32, #tpu.memory_space<vmem>>, vector<1x1x4x128xf32>
    %58 = vector.shape_cast %57 : vector<1x1x4x128xf32> to vector<4x128xf32>
    %c1_32 = arith.constant 1 : index
    %59 = arith.index_cast %c2_i32 : i32 to index
    %c0_33 = arith.constant 0 : index
    %c0_34 = arith.constant 0 : index
    %60 = vector.load %arg3[%c1_32, %59, %c0_33, %c0_34] : memref<2x4x4x128xf32, #tpu.memory_space<vmem>>, vector<1x1x4x128xf32>
    %61 = vector.shape_cast %60 : vector<1x1x4x128xf32> to vector<4x128xf32>
    %62 = vector.broadcast %52 : vector<1x128xf32> to vector<4x128xf32>
    %63 = arith.mulf %62, %58 : vector<4x128xf32>
    %64 = vector.broadcast %55 : vector<1x128xf32> to vector<4x128xf32>
    %65 = arith.mulf %64, %61 : vector<4x128xf32>
    %66 = arith.subf %63, %65 : vector<4x128xf32>
    %67 = arith.addf %43, %66 : vector<4x128xf32>
    %68 = vector.broadcast %52 : vector<1x128xf32> to vector<4x128xf32>
    %69 = arith.mulf %68, %61 : vector<4x128xf32>
    %70 = vector.broadcast %55 : vector<1x128xf32> to vector<4x128xf32>
    %71 = arith.mulf %70, %58 : vector<4x128xf32>
    %72 = arith.addf %69, %71 : vector<4x128xf32>
    %73 = arith.addf %49, %72 : vector<4x128xf32>
    %c3_i32 = arith.constant 3 : i32
    %c0_35 = arith.constant 0 : index
    %74 = arith.index_cast %c3_i32 : i32 to index
    %c0_36 = arith.constant 0 : index
    %c0_37 = arith.constant 0 : index
    %75 = vector.load %arg2[%c0_35, %74, %c0_36, %c0_37] : memref<2x4x2x128xf32, #tpu.memory_space<vmem>>, vector<1x1x1x128xf32>
    %76 = vector.shape_cast %75 : vector<1x1x1x128xf32> to vector<1x128xf32>
    %c1_38 = arith.constant 1 : index
    %77 = arith.index_cast %c3_i32 : i32 to index
    %c0_39 = arith.constant 0 : index
    %c0_40 = arith.constant 0 : index
    %78 = vector.load %arg2[%c1_38, %77, %c0_39, %c0_40] : memref<2x4x2x128xf32, #tpu.memory_space<vmem>>, vector<1x1x1x128xf32>
    %79 = vector.shape_cast %78 : vector<1x1x1x128xf32> to vector<1x128xf32>
    %c0_41 = arith.constant 0 : index
    %80 = arith.index_cast %c3_i32 : i32 to index
    %c0_42 = arith.constant 0 : index
    %c0_43 = arith.constant 0 : index
    %81 = vector.load %arg3[%c0_41, %80, %c0_42, %c0_43] : memref<2x4x4x128xf32, #tpu.memory_space<vmem>>, vector<1x1x4x128xf32>
    %82 = vector.shape_cast %81 : vector<1x1x4x128xf32> to vector<4x128xf32>
    %c1_44 = arith.constant 1 : index
    %83 = arith.index_cast %c3_i32 : i32 to index
    %c0_45 = arith.constant 0 : index
    %c0_46 = arith.constant 0 : index
    %84 = vector.load %arg3[%c1_44, %83, %c0_45, %c0_46] : memref<2x4x4x128xf32, #tpu.memory_space<vmem>>, vector<1x1x4x128xf32>
    %85 = vector.shape_cast %84 : vector<1x1x4x128xf32> to vector<4x128xf32>
    %86 = vector.broadcast %76 : vector<1x128xf32> to vector<4x128xf32>
    %87 = arith.mulf %86, %82 : vector<4x128xf32>
    %88 = vector.broadcast %79 : vector<1x128xf32> to vector<4x128xf32>
    %89 = arith.mulf %88, %85 : vector<4x128xf32>
    %90 = arith.subf %87, %89 : vector<4x128xf32>
    %91 = arith.addf %67, %90 : vector<4x128xf32>
    %92 = vector.broadcast %76 : vector<1x128xf32> to vector<4x128xf32>
    %93 = arith.mulf %92, %85 : vector<4x128xf32>
    %94 = vector.broadcast %79 : vector<1x128xf32> to vector<4x128xf32>
    %95 = arith.mulf %94, %82 : vector<4x128xf32>
    %96 = arith.addf %93, %95 : vector<4x128xf32>
    %97 = arith.addf %73, %96 : vector<4x128xf32>
    %c4_i32 = arith.constant 4 : i32
    %c0_47 = arith.constant 0 : index
    %c0_48 = arith.constant 0 : index
    %c0_49 = arith.constant 0 : index
    %98 = vector.load %arg4[%c0_47, %c0_48, %c0_49] : memref<2x8x128xf32, #tpu.memory_space<vmem>>, vector<1x4x128xf32>
    %99 = vector.shape_cast %98 : vector<1x4x128xf32> to vector<4x128xf32>
    %100 = vector.shape_cast %91 : vector<4x128xf32> to vector<1x4x128xf32>
    tpu.vector_store %arg4[%c0_47, %c0_48, %c0_49], %100 {strides = array<i32>} : memref<2x8x128xf32, #tpu.memory_space<vmem>>, vector<1x4x128xf32>,
    %c1_50 = arith.constant 1 : index
    %c0_51 = arith.constant 0 : index
    %c0_52 = arith.constant 0 : index
    %101 = vector.load %arg4[%c1_50, %c0_51, %c0_52] : memref<2x8x128xf32, #tpu.memory_space<vmem>>, vector<1x4x128xf32>
    %102 = vector.shape_cast %101 : vector<1x4x128xf32> to vector<4x128xf32>
    %103 = vector.shape_cast %97 : vector<4x128xf32> to vector<1x4x128xf32>
    tpu.vector_store %arg4[%c1_50, %c0_51, %c0_52], %103 {strides = array<i32>} : memref<2x8x128xf32, #tpu.memory_space<vmem>>, vector<1x4x128xf32>,
    %cst_53 = arith.constant 0.000000e+00 : f32
    %104 = vector.broadcast %cst_53 : f32 to vector<4x128xf32>
    %cst_54 = arith.constant 0.000000e+00 : f32
    %105 = vector.broadcast %cst_54 : f32 to vector<4x128xf32>
    %c0_i32_55 = arith.constant 0 : i32
    %c0_56 = arith.constant 0 : index
    %106 = arith.index_cast %c0_i32_55 : i32 to index
    %c1_57 = arith.constant 1 : index
    %c0_58 = arith.constant 0 : index
    %107 = vector.load %arg2[%c0_56, %106, %c1_57, %c0_58] : memref<2x4x2x128xf32, #tpu.memory_space<vmem>>, vector<1x1x1x128xf32>
    %108 = vector.shape_cast %107 : vector<1x1x1x128xf32> to vector<1x128xf32>
    %c1_59 = arith.constant 1 : index
    %109 = arith.index_cast %c0_i32_55 : i32 to index
    %c1_60 = arith.constant 1 : index
    %c0_61 = arith.constant 0 : index
    %110 = vector.load %arg2[%c1_59, %109, %c1_60, %c0_61] : memref<2x4x2x128xf32, #tpu.memory_space<vmem>>, vector<1x1x1x128xf32>
    %111 = vector.shape_cast %110 : vector<1x1x1x128xf32> to vector<1x128xf32>
    %c0_62 = arith.constant 0 : index
    %112 = arith.index_cast %c0_i32_55 : i32 to index
    %c0_63 = arith.constant 0 : index
    %c0_64 = arith.constant 0 : index
    %113 = vector.load %arg3[%c0_62, %112, %c0_63, %c0_64] : memref<2x4x4x128xf32, #tpu.memory_space<vmem>>, vector<1x1x4x128xf32>
    %114 = vector.shape_cast %113 : vector<1x1x4x128xf32> to vector<4x128xf32>
    %c1_65 = arith.constant 1 : index
    %115 = arith.index_cast %c0_i32_55 : i32 to index
    %c0_66 = arith.constant 0 : index
    %c0_67 = arith.constant 0 : index
    %116 = vector.load %arg3[%c1_65, %115, %c0_66, %c0_67] : memref<2x4x4x128xf32, #tpu.memory_space<vmem>>, vector<1x1x4x128xf32>
    %117 = vector.shape_cast %116 : vector<1x1x4x128xf32> to vector<4x128xf32>
    %118 = vector.broadcast %108 : vector<1x128xf32> to vector<4x128xf32>
    %119 = arith.mulf %118, %114 : vector<4x128xf32>
    %120 = vector.broadcast %111 : vector<1x128xf32> to vector<4x128xf32>
    %121 = arith.mulf %120, %117 : vector<4x128xf32>
    %122 = arith.subf %119, %121 : vector<4x128xf32>
    %123 = arith.addf %104, %122 : vector<4x128xf32>
    %124 = vector.broadcast %108 : vector<1x128xf32> to vector<4x128xf32>
    %125 = arith.mulf %124, %117 : vector<4x128xf32>
    %126 = vector.broadcast %111 : vector<1x128xf32> to vector<4x128xf32>
    %127 = arith.mulf %126, %114 : vector<4x128xf32>
    %128 = arith.addf %125, %127 : vector<4x128xf32>
    %129 = arith.addf %105, %128 : vector<4x128xf32>
    %c1_i32_68 = arith.constant 1 : i32
    %c0_69 = arith.constant 0 : index
    %130 = arith.index_cast %c1_i32_68 : i32 to index
    %c1_70 = arith.constant 1 : index
    %c0_71 = arith.constant 0 : index
    %131 = vector.load %arg2[%c0_69, %130, %c1_70, %c0_71] : memref<2x4x2x128xf32, #tpu.memory_space<vmem>>, vector<1x1x1x128xf32>
    %132 = vector.shape_cast %131 : vector<1x1x1x128xf32> to vector<1x128xf32>
    %c1_72 = arith.constant 1 : index
    %133 = arith.index_cast %c1_i32_68 : i32 to index
    %c1_73 = arith.constant 1 : index
    %c0_74 = arith.constant 0 : index
    %134 = vector.load %arg2[%c1_72, %133, %c1_73, %c0_74] : memref<2x4x2x128xf32, #tpu.memory_space<vmem>>, vector<1x1x1x128xf32>
    %135 = vector.shape_cast %134 : vector<1x1x1x128xf32> to vector<1x128xf32>
    %c0_75 = arith.constant 0 : index
    %136 = arith.index_cast %c1_i32_68 : i32 to index
    %c0_76 = arith.constant 0 : index
    %c0_77 = arith.constant 0 : index
    %137 = vector.load %arg3[%c0_75, %136, %c0_76, %c0_77] : memref<2x4x4x128xf32, #tpu.memory_space<vmem>>, vector<1x1x4x128xf32>
    %138 = vector.shape_cast %137 : vector<1x1x4x128xf32> to vector<4x128xf32>
    %c1_78 = arith.constant 1 : index
    %139 = arith.index_cast %c1_i32_68 : i32 to index
    %c0_79 = arith.constant 0 : index
    %c0_80 = arith.constant 0 : index
    %140 = vector.load %arg3[%c1_78, %139, %c0_79, %c0_80] : memref<2x4x4x128xf32, #tpu.memory_space<vmem>>, vector<1x1x4x128xf32>
    %141 = vector.shape_cast %140 : vector<1x1x4x128xf32> to vector<4x128xf32>
    %142 = vector.broadcast %132 : vector<1x128xf32> to vector<4x128xf32>
    %143 = arith.mulf %142, %138 : vector<4x128xf32>
    %144 = vector.broadcast %135 : vector<1x128xf32> to vector<4x128xf32>
    %145 = arith.mulf %144, %141 : vector<4x128xf32>
    %146 = arith.subf %143, %145 : vector<4x128xf32>
    %147 = arith.addf %123, %146 : vector<4x128xf32>
    %148 = vector.broadcast %132 : vector<1x128xf32> to vector<4x128xf32>
    %149 = arith.mulf %148, %141 : vector<4x128xf32>
    %150 = vector.broadcast %135 : vector<1x128xf32> to vector<4x128xf32>
    %151 = arith.mulf %150, %138 : vector<4x128xf32>
    %152 = arith.addf %149, %151 : vector<4x128xf32>
    %153 = arith.addf %129, %152 : vector<4x128xf32>
    %c2_i32_81 = arith.constant 2 : i32
    %c0_82 = arith.constant 0 : index
    %154 = arith.index_cast %c2_i32_81 : i32 to index
    %c1_83 = arith.constant 1 : index
    %c0_84 = arith.constant 0 : index
    %155 = vector.load %arg2[%c0_82, %154, %c1_83, %c0_84] : memref<2x4x2x128xf32, #tpu.memory_space<vmem>>, vector<1x1x1x128xf32>
    %156 = vector.shape_cast %155 : vector<1x1x1x128xf32> to vector<1x128xf32>
    %c1_85 = arith.constant 1 : index
    %157 = arith.index_cast %c2_i32_81 : i32 to index
    %c1_86 = arith.constant 1 : index
    %c0_87 = arith.constant 0 : index
    %158 = vector.load %arg2[%c1_85, %157, %c1_86, %c0_87] : memref<2x4x2x128xf32, #tpu.memory_space<vmem>>, vector<1x1x1x128xf32>
    %159 = vector.shape_cast %158 : vector<1x1x1x128xf32> to vector<1x128xf32>
    %c0_88 = arith.constant 0 : index
    %160 = arith.index_cast %c2_i32_81 : i32 to index
    %c0_89 = arith.constant 0 : index
    %c0_90 = arith.constant 0 : index
    %161 = vector.load %arg3[%c0_88, %160, %c0_89, %c0_90] : memref<2x4x4x128xf32, #tpu.memory_space<vmem>>, vector<1x1x4x128xf32>
    %162 = vector.shape_cast %161 : vector<1x1x4x128xf32> to vector<4x128xf32>
    %c1_91 = arith.constant 1 : index
    %163 = arith.index_cast %c2_i32_81 : i32 to index
    %c0_92 = arith.constant 0 : index
    %c0_93 = arith.constant 0 : index
    %164 = vector.load %arg3[%c1_91, %163, %c0_92, %c0_93] : memref<2x4x4x128xf32, #tpu.memory_space<vmem>>, vector<1x1x4x128xf32>
    %165 = vector.shape_cast %164 : vector<1x1x4x128xf32> to vector<4x128xf32>
    %166 = vector.broadcast %156 : vector<1x128xf32> to vector<4x128xf32>
    %167 = arith.mulf %166, %162 : vector<4x128xf32>
    %168 = vector.broadcast %159 : vector<1x128xf32> to vector<4x128xf32>
    %169 = arith.mulf %168, %165 : vector<4x128xf32>
    %170 = arith.subf %167, %169 : vector<4x128xf32>
    %171 = arith.addf %147, %170 : vector<4x128xf32>
    %172 = vector.broadcast %156 : vector<1x128xf32> to vector<4x128xf32>
    %173 = arith.mulf %172, %165 : vector<4x128xf32>
    %174 = vector.broadcast %159 : vector<1x128xf32> to vector<4x128xf32>
    %175 = arith.mulf %174, %162 : vector<4x128xf32>
    %176 = arith.addf %173, %175 : vector<4x128xf32>
    %177 = arith.addf %153, %176 : vector<4x128xf32>
    %c3_i32_94 = arith.constant 3 : i32
    %c0_95 = arith.constant 0 : index
    %178 = arith.index_cast %c3_i32_94 : i32 to index
    %c1_96 = arith.constant 1 : index
    %c0_97 = arith.constant 0 : index
    %179 = vector.load %arg2[%c0_95, %178, %c1_96, %c0_97] : memref<2x4x2x128xf32, #tpu.memory_space<vmem>>, vector<1x1x1x128xf32>
    %180 = vector.shape_cast %179 : vector<1x1x1x128xf32> to vector<1x128xf32>
    %c1_98 = arith.constant 1 : index
    %181 = arith.index_cast %c3_i32_94 : i32 to index
    %c1_99 = arith.constant 1 : index
    %c0_100 = arith.constant 0 : index
    %182 = vector.load %arg2[%c1_98, %181, %c1_99, %c0_100] : memref<2x4x2x128xf32, #tpu.memory_space<vmem>>, vector<1x1x1x128xf32>
    %183 = vector.shape_cast %182 : vector<1x1x1x128xf32> to vector<1x128xf32>
    %c0_101 = arith.constant 0 : index
    %184 = arith.index_cast %c3_i32_94 : i32 to index
    %c0_102 = arith.constant 0 : index
    %c0_103 = arith.constant 0 : index
    %185 = vector.load %arg3[%c0_101, %184, %c0_102, %c0_103] : memref<2x4x4x128xf32, #tpu.memory_space<vmem>>, vector<1x1x4x128xf32>
    %186 = vector.shape_cast %185 : vector<1x1x4x128xf32> to vector<4x128xf32>
    %c1_104 = arith.constant 1 : index
    %187 = arith.index_cast %c3_i32_94 : i32 to index
    %c0_105 = arith.constant 0 : index
    %c0_106 = arith.constant 0 : index
    %188 = vector.load %arg3[%c1_104, %187, %c0_105, %c0_106] : memref<2x4x4x128xf32, #tpu.memory_space<vmem>>, vector<1x1x4x128xf32>
    %189 = vector.shape_cast %188 : vector<1x1x4x128xf32> to vector<4x128xf32>
    %190 = vector.broadcast %180 : vector<1x128xf32> to vector<4x128xf32>
    %191 = arith.mulf %190, %186 : vector<4x128xf32>
    %192 = vector.broadcast %183 : vector<1x128xf32> to vector<4x128xf32>
    %193 = arith.mulf %192, %189 : vector<4x128xf32>
    %194 = arith.subf %191, %193 : vector<4x128xf32>
    %195 = arith.addf %171, %194 : vector<4x128xf32>
    %196 = vector.broadcast %180 : vector<1x128xf32> to vector<4x128xf32>
    %197 = arith.mulf %196, %189 : vector<4x128xf32>
    %198 = vector.broadcast %183 : vector<1x128xf32> to vector<4x128xf32>
    %199 = arith.mulf %198, %186 : vector<4x128xf32>
    %200 = arith.addf %197, %199 : vector<4x128xf32>
    %201 = arith.addf %177, %200 : vector<4x128xf32>
    %c4_i32_107 = arith.constant 4 : i32
    %c0_108 = arith.constant 0 : index
    %c4 = arith.constant 4 : index
    %c0_109 = arith.constant 0 : index
    %202 = vector.load %arg4[%c0_108, %c4, %c0_109] : memref<2x8x128xf32, #tpu.memory_space<vmem>>, vector<1x4x128xf32>
    %203 = vector.shape_cast %202 : vector<1x4x128xf32> to vector<4x128xf32>
    %204 = vector.shape_cast %195 : vector<4x128xf32> to vector<1x4x128xf32>
    tpu.vector_store %arg4[%c0_108, %c4, %c0_109], %204 {strides = array<i32>} : memref<2x8x128xf32, #tpu.memory_space<vmem>>, vector<1x4x128xf32>,
    %c1_110 = arith.constant 1 : index
    %c4_111 = arith.constant 4 : index
    %c0_112 = arith.constant 0 : index
    %205 = vector.load %arg4[%c1_110, %c4_111, %c0_112] : memref<2x8x128xf32, #tpu.memory_space<vmem>>, vector<1x4x128xf32>
    %206 = vector.shape_cast %205 : vector<1x4x128xf32> to vector<4x128xf32>
    %207 = vector.shape_cast %201 : vector<4x128xf32> to vector<1x4x128xf32>
    tpu.vector_store %arg4[%c1_110, %c4_111, %c0_112], %207 {strides = array<i32>} : memref<2x8x128xf32, #tpu.memory_space<vmem>>, vector<1x4x128xf32>,
    return
  }
  func.func @transform_0(%arg0: i32, %arg1: i32) -> (i32, i32, i32, i32) {
    %c0_i32 = arith.constant 0 : i32
    %c0_i32_0 = arith.constant 0 : i32
    %c0_i32_1 = arith.constant 0 : i32
    return %c0_i32, %c0_i32_0, %arg1, %arg0 : i32, i32, i32, i32
  }
  func.func @transform_1(%arg0: i32, %arg1: i32) -> (i32, i32, i32, i32) {
    %c0_i32 = arith.constant 0 : i32
    %c0_i32_0 = arith.constant 0 : i32
    %c0_i32_1 = arith.constant 0 : i32
    %c0_i32_2 = arith.constant 0 : i32
    return %c0_i32, %c0_i32_0, %c0_i32_1, %arg0 : i32, i32, i32, i32
  }
  func.func @transform_2(%arg0: i32, %arg1: i32) -> (i32, i32, i32) {
    %c0_i32 = arith.constant 0 : i32
    %c0_i32_0 = arith.constant 0 : i32
    return %c0_i32, %arg1, %arg0 : i32, i32, i32
  }
}

</mosaic_0001>

<bundles_post_ra>
// kernel: tpu_custom_call.1
= control target key start
LH: loop header
LB: loop body
LE: loop exit
PB: predicated region body
PF: predicated region fallthrough
CT: control target
= control target key end

     0   :  { %7 = vsyncpa [#allocation3], 0  ;;  %s331_s0 = inlined_call_operand.hbm [shape: f32[2,4,2,128], index: 0, kind: input, shape index: {}]   ;;  %s332_s1 = inlined_call_operand.hbm [shape: f32[2,4,4,128], index: 1, kind: input, shape index: {}]   ;;  %s333_s2 = inlined_call_operand.hbm [shape: f32[2,8,128], index: 2, kind: output, shape index: {}]  }
   0x1   :  { %8 = vsyncpa [#allocation6], 0 }
   0x2   :  { %9 = vsyncpa [#allocation4], 0  ;;  %s14_s11 = sshll.u32 %s331_s0, 4  ;;  %s298_s12 = smov [#allocation2]   ;;  %s15_s11 = int_to_ptr.hbm [resolvable:$true] %s14_s11 }
   0x3   :  { %s16_s13 = sshll.u32 %s298_s12, 4  ;;  %s27_s16 = sshll.u32 %s332_s1, 4  ;;  %s17_s13 = int_to_ptr.vmem [resolvable:$true] %s16_s13  ;;  %s28_s16 = int_to_ptr.hbm [resolvable:$true] %s27_s16 }
   0x4   :  { %s299_s17 = smov 32   ;;  %s300_s18 = smov 2  }
   0x5   :  { %22 = dma.hbm_to_vmem [thread:$0]  %s15_s11, 256, %s17_s13, [#allocation3], %s299_s17, %s299_s17, %s300_s18  }
   0x6   :  { %s301_s19 = smov [#allocation5]   ;;  %s302_s21 = smov 64  }
   0x7   :  { %s29_s20 = sshll.u32 %s301_s19, 4  ;;  %s303_s22 = smov 4   ;;  %s30_s20 = int_to_ptr.vmem [resolvable:$true] %s29_s20 }
   0x8   :  { %35 = dma.hbm_to_vmem [thread:$0]  %s28_s16, 512, %s30_s20, [#allocation6], %s302_s21, %s302_s21, %s303_s22  }
   0x9   :  { %292 = dma.done.wait [#allocation3], 256  }
   0xa   :  { %293 = vsyncadd [#allocation3], 4294967040 }
   0xb   :  { %294 = dma.done.wait [#allocation6], 512  }
   0xc   :  { %295 = vsyncadd [#allocation6], 4294966784  ;;  %v47_v0 = vld [vmem:[#allocation5] sm:$0xf]  ;;  %v49_v1 = vld [vmem:[#allocation5 + $0x10] sm:$0xf] }
   0xd   :  { %v204_v2 = vld [vmem:[#allocation2] ss:$0 sm:$0xff]  ;;  %v205_v3 = vld [vmem:[#allocation2 + $0x8] ss:$0 sm:$0xff]  ;;  %v65_v4 = vld [vmem:[#allocation5 + $0x4] sm:$0xf] }
   0xe   :  { %v51_v5 = vmul.f32 %v204_v2, %v47_v0  ;;  %v53_v6 = vmul.f32 %v205_v3, %v49_v1  ;;  %v67_v7 = vld [vmem:[#allocation5 + $0x14] sm:$0xf]  ;;  %v206_v8 = vld [vmem:[#allocation2 + $0x2] ss:$0 sm:$0xff]  ;;  %v207_v9 = vld [vmem:[#allocation2 + $0xa] ss:$0 sm:$0xff]  ;;  %v56_v10 = vmul.f32 %v204_v2, %v49_v1  ;;  %v57_v11 = vmul.f32 %v205_v3, %v47_v0 }
   0xf   :  { %v83_v12 = vld [vmem:[#allocation5 + $0x8] sm:$0xf]  ;;  %v69_v14 = vmul.f32 %v206_v8, %v65_v4  ;;  %v71_v15 = vmul.f32 %v207_v9, %v67_v7  ;;  %v85_v16 = vld [vmem:[#allocation5 + $0x18] sm:$0xf]  ;;  %v208_v17 = vld [vmem:[#allocation2 + $0x4] ss:$0 sm:$0xff]  ;;  %v74_v21 = vmul.f32 %v206_v8, %v67_v7  ;;  %v75_v22 = vmul.f32 %v207_v9, %v65_v4 }
  0x10   :  { %v54_v13 = vsub.f32 %v51_v5, %v53_v6  ;;  %v209_v18 = vld [vmem:[#allocation2 + $0xc] ss:$0 sm:$0xff]  ;;  %v101_v19 = vld [vmem:[#allocation5 + $0xc] sm:$0xf]  ;;  %v58_v20 = vadd.f32 %v57_v11, %v56_v10  ;;  %v87_v24 = vmul.f32 %v208_v17, %v83_v12  ;;  %v210_v27 = vld [vmem:[#allocation2 + $0x6] ss:$0 sm:$0xff]  ;;  %v92_v29 = vmul.f32 %v208_v17, %v85_v16 }
  0x11   :  { %v72_v23 = vsub.f32 %v69_v14, %v71_v15  ;;  %v89_v25 = vmul.f32 %v209_v18, %v85_v16  ;;  %v103_v26 = vld [vmem:[#allocation5 + $0x1c] sm:$0xf]  ;;  %v76_v30 = vadd.f32 %v75_v22, %v74_v21  ;;  %v93_v31 = vmul.f32 %v209_v18, %v83_v12  ;;  %v119_v32 = vld [vmem:[#allocation5] sm:$0xf]  ;;  %v120_v37 = vld [vmem:[#allocation5 + $0x10] sm:$0xf] }
  0x12   :  { %v211_v28 = vld [vmem:[#allocation2 + $0xe] ss:$0 sm:$0xff]  ;;  %v105_v35 = vmul.f32 %v210_v27, %v101_v19  ;;  %v212_v38 = vld [vmem:[#allocation2 + $0x1] ss:$0 sm:$0xff]  ;;  %v213_v39 = vld [vmem:[#allocation2 + $0x9] ss:$0 sm:$0xff]  ;;  %v110_v42 = vmul.f32 %v210_v27, %v103_v26 }
  0x13   :  { %v73_v33 = vadd.f32 %v72_v23, %v54_v13  ;;  %v90_v34 = vsub.f32 %v87_v24, %v89_v25  ;;  %v107_v36 = vmul.f32 %v211_v28, %v103_v26  ;;  %v77_v40 = vadd.f32 %v76_v30, %v58_v20  ;;  %v133_v44 = vld [vmem:[#allocation5 + $0x4] sm:$0xf]  ;;  %v134_v49 = vld [vmem:[#allocation5 + $0x14] sm:$0xf]  ;;  %v214_v50 = vld [vmem:[#allocation2 + $0x3] ss:$0 sm:$0xff] }
  0x14   :  { %v94_v41 = vadd.f32 %v93_v31, %v92_v29  ;;  %v111_v43 = vmul.f32 %v211_v28, %v101_v19  ;;  %v122_v47 = vmul.f32 %v212_v38, %v119_v32  ;;  %v124_v48 = vmul.f32 %v213_v39, %v120_v37  ;;  %v215_v51 = vld [vmem:[#allocation2 + $0xb] ss:$0 sm:$0xff]  ;;  %v147_v54 = vld [vmem:[#allocation5 + $0x8] sm:$0xf]  ;;  %v216_v62 = vld [vmem:[#allocation2 + $0x5] ss:$0 sm:$0xff] }
  0x15   :  { %v91_v45 = vadd.f32 %v90_v34, %v73_v33  ;;  %v108_v46 = vsub.f32 %v105_v35, %v107_v36  ;;  %v127_v55 = vmul.f32 %v212_v38, %v120_v37  ;;  %v128_v56 = vmul.f32 %v213_v39, %v119_v32  ;;  %v148_v61 = vld [vmem:[#allocation5 + $0x18] sm:$0xf]  ;;  %v217_v63 = vld [vmem:[#allocation2 + $0xd] ss:$0 sm:$0xff]  ;;  %v161_v1 = vld [vmem:[#allocation5 + $0xc] sm:$0xf] }
  0x16   :  { %v95_v52 = vadd.f32 %v94_v41, %v77_v40  ;;  %v112_v53 = vadd.f32 %v111_v43, %v110_v42  ;;  %v125_v58 = vsub.f32 %v122_v47, %v124_v48  ;;  %v136_v59 = vmul.f32 %v214_v50, %v133_v44  ;;  %v162_v8 = vld [vmem:[#allocation5 + $0x1c] sm:$0xf]  ;;  %v218_v9 = vld [vmem:[#allocation2 + $0x7] ss:$0 sm:$0xff]  ;;  %s304_s0 = smov [#allocation7]   ;;  %s181_s25 = sshll.u32 %s333_s2, 4  ;;  %s182_s25 = int_to_ptr.hbm [resolvable:$true] %s181_s25 }
  0x17   :  { %v109_v57 = vadd.f32 %v108_v46, %v91_v45  ;;  %v138_v60 = vmul.f32 %v215_v51, %v134_v49  ;;  %v129_v2 = vadd.f32 %v128_v56, %v127_v55  ;;  %v141_v3 = vmul.f32 %v214_v50, %v134_v49  ;;  %v219_v11 = vld [vmem:[#allocation2 + $0xf] ss:$0 sm:$0xff]  ;;  %s179_s1 = sshll.u32 %s304_s0, 4  ;;  %s305_s26 = smov 128   ;;  %s180_s1 = int_to_ptr.vmem [resolvable:$true] %s179_s1 }
  0x18   :  { %v113_v0 = vadd.f32 %v112_v53, %v95_v52  ;;  %v142_v4 = vmul.f32 %v215_v51, %v133_v44  ;;  %v150_v6 = vmul.f32 %v216_v62, %v147_v54  ;;  %v152_v7 = vmul.f32 %v217_v63, %v148_v61  ;;  %s306_s27 = smov 8  }
  0x19   :  { %114 = vst [vmem:[#allocation7] sm:$0xf] %v109_v57  ;;  %v139_v5 = vsub.f32 %v136_v59, %v138_v60  ;;  %v155_v10 = vmul.f32 %v216_v62, %v148_v61  ;;  %v156_v13 = vmul.f32 %v217_v63, %v147_v54  ;;  %v164_v16 = vmul.f32 %v218_v9, %v161_v1 }
  0x1a   :  { %116 = vst [vmem:[#allocation7 + $0x8] sm:$0xf] %v113_v0  ;;  %v143_v12 = vadd.f32 %v142_v4, %v141_v3  ;;  %v153_v15 = vsub.f32 %v150_v6, %v152_v7  ;;  %v169_v17 = vmul.f32 %v218_v9, %v162_v8  ;;  %v166_v18 = vmul.f32 %v219_v11, %v162_v8 }
  0x1b   :  { %v140_v14 = vadd.f32 %v139_v5, %v125_v58  ;;  %v157_v20 = vadd.f32 %v156_v13, %v155_v10  ;;  %v170_v21 = vmul.f32 %v219_v11, %v161_v1 }
  0x1c   :  { %v144_v19 = vadd.f32 %v143_v12, %v129_v2  ;;  %v167_v23 = vsub.f32 %v164_v16, %v166_v18 }
  0x1d   :  { %v154_v22 = vadd.f32 %v153_v15, %v140_v14  ;;  %v171_v25 = vadd.f32 %v170_v21, %v169_v17 }
  0x1e   :  { %v158_v24 = vadd.f32 %v157_v20, %v144_v19 }
  0x1f   :  { %v168_v26 = vadd.f32 %v167_v23, %v154_v22 }
  0x20   :  { %v172_v27 = vadd.f32 %v171_v25, %v158_v24 }
  0x21   :  { %173 = vst [vmem:[#allocation7 + $0x4] sm:$0xf] %v168_v26 }
  0x22   :  { %174 = vst [vmem:[#allocation7 + $0xc] sm:$0xf] %v172_v27 }
  0x23   :  { %187 = dma.vmem_to_hbm [thread:$0]  %s180_s1, 256, %s182_s25, [#allocation4], %s305_s26, %s305_s26, %s306_s27  }
  0x24   :  { %296 = dma.done.wait [#allocation4], 256  }
  0x25   :  { %297 = vsyncadd [#allocation4], 4294967040 }
  0x26   :  { %192 = vsyncpa [#allocation3], 1 }
  0x27   :  { %193 = vsyncpa [#allocation6], 1 }
  0x28   :  { %194 = vsyncpa [#allocation4], 1 }

</bundles_post_ra>
